<compile_context>
chip_gen: v6e
topology: v6e:2x2x1
jax: 0.10.0
libtpu: 0.0.40
codegen_flags: <defaults>
</compile_context>

<pallas_src>
import numpy as np
import jax
import jax.numpy as jnp
from jax import lax
from jax.experimental import pallas as pl
from jax.experimental.pallas import tpu as pltpu


def _round_up(x, m):
    return ((x + m - 1) // m) * m


def _cdiv(a, b):
    return -(-a // b)


# ---------------------------------------------------------------------------
# Kernel: features on sublanes, nodes on lanes.
#   x_ref  : (problem_size, tile)        lane-dense input slab
#   at_ref : (kp, kp)                    transposed mean-aggregation matrix
#   w*_ref : (cout, cin) lin_l / lin_r weights (already transposed on host)
#   b*_ref : (cout, 1)   lin_l bias
#   out_ref: (rnn_size, tile)            lane-dense output slab
# ---------------------------------------------------------------------------
def encoder_flows_kernel(at_ref, x_ref,
                         wl1_ref, wr1_ref, b1_ref,
                         wl2_ref, wr2_ref, b2_ref,
                         wl3_ref, wr3_ref, b3_ref,
                         wl4_ref, wr4_ref, b4_ref,
                         out_ref):
    layers = ((wl1_ref, wr1_ref, b1_ref),
              (wl2_ref, wr2_ref, b2_ref),
              (wl3_ref, wr3_ref, b3_ref),
              (wl4_ref, wr4_ref, b4_ref))

    # ---- main path: every node.  Only nodes 0..k-1 ever receive messages,
    # so no aggregation work here at all (they are patched below on tile 0).
    x = x_ref[...]                                                # (cin, tile)
    for wl_ref, wr_ref, b_ref in layers:
        out = jnp.dot(wr_ref[...], x,
                      preferred_element_type=jnp.float32) + b_ref[...]
        ssq = jnp.sum(out * out, axis=0, keepdims=True)           # (1, tile)
        # F.normalize(out, p=2, dim=-1) with eps=1e-12 clamp on the norm
        x = out * lax.rsqrt(jnp.maximum(ssq, 1e-24))
    out_ref[...] = jnp.maximum(x, 0.0)                            # F.relu

    # ---- aggregation correction: global nodes 0..k-1 all live in tile 0.
    kp = at_ref.shape[0]

    @pl.when(pl.program_id(0) == 0)
    def _():
        xk = x_ref[:, :kp]                                        # (cin, kp)
        for wl_ref, wr_ref, b_ref in layers:
            # mean aggregation (transposed): aggr^T = x^T @ A^T
            aggr = jnp.dot(xk, at_ref[...],
                           preferred_element_type=jnp.float32)    # (cin, kp)
            outk = (jnp.dot(wl_ref[...], aggr,
                            preferred_element_type=jnp.float32)
                    + jnp.dot(wr_ref[...], xk,
                              preferred_element_type=jnp.float32)
                    + b_ref[...])                                 # (cout, kp)
            ssq = jnp.sum(outk * outk, axis=0, keepdims=True)
            xk = outk * lax.rsqrt(jnp.maximum(ssq, 1e-24))
        out_ref[:, :kp] = jnp.maximum(xk, 0.0)


# ---------------------------------------------------------------------------
# Host-side helpers
# ---------------------------------------------------------------------------
def build_aggregation_matrix_t(k, kp):
    """(kp, kp) transposed mean-aggregation matrix A^T.

    In row form A[j, i] = 1/j for i < j (node j averages source nodes 0..j-1,
    node 0 and nodes >= k receive nothing -> 0), reproducing the PyTorch
    edge_index semantics exactly (node ids are never offset per batch element,
    repeated identical edges do not change the mean).
    """
    AT = np.zeros((kp, kp), dtype=np.float32)
    for j in range(1, k):
        AT[:j, j] = 1.0 / j
    return jnp.asarray(AT)


def init_params(key, problem_size, intermediate_size, rnn_size):
    dims = [(problem_size, intermediate_size),
            (intermediate_size, 2 * intermediate_size),
            (2 * intermediate_size, intermediate_size),
            (intermediate_size, rnn_size)]
    params = []
    for (cin, cout) in dims:
        key, k1, k2, k3 = jax.random.split(key, 4)
        scale = 1.0 / np.sqrt(cin)
        wl = jax.random.normal(k1, (cin, cout), jnp.float32) * scale  # lin_l weight
        bl = jax.random.normal(k2, (1, cout), jnp.float32) * 0.1      # lin_l bias
        wr = jax.random.normal(k3, (cin, cout), jnp.float32) * scale  # lin_r weight
        params += [wl, bl, wr]
    return params


def _choose_tiling(N, kp, target_tile):
    """Lane-dim tile (multiple of 128), sized from N; >=2 tiles for v7x."""
    min_tile = max(128, _round_up(kp, 128))
    if N <= min_tile:
        return min_tile, min_tile
    num_tiles = max(2, _cdiv(N, target_tile))
    tile = max(min_tile, _round_up(_cdiv(N, num_tiles), 128))
    num_tiles = max(2, _cdiv(N, tile))
    return tile, num_tiles * tile


def encoder_flows_forward(flow_matrix, params, *, target_tile=2048):
    batch_size, k, p = flow_matrix.shape
    N = batch_size * k
    kp = _round_up(k, 8)

    # Transpose each layer's weights into (cout, cin) / (cout, 1) for the
    # feature-on-sublane layout (host-side layout plumbing, tiny arrays).
    tparams = []
    rnn_size = None
    for i in range(4):
        wl, bl, wr = params[3 * i], params[3 * i + 1], params[3 * i + 2]
        tparams += [wl.T, wr.T, bl.T]
        rnn_size = wl.shape[1]

    tile, n_pad = _choose_tiling(N, kp, target_tile)
    num_tiles = n_pad // tile

    xT = flow_matrix.reshape(N, p).astype(jnp.float32).T          # (p, N)
    if n_pad != N:
        xT = jnp.pad(xT, ((0, 0), (0, n_pad - N)))                # zero cols

    AT = build_aggregation_matrix_t(k, kp)

    def resident(arr):                                            # VMEM-resident
        return pl.BlockSpec(arr.shape, lambda i: (0, 0))

    in_specs = ([resident(AT),
                 pl.BlockSpec((p, tile), lambda i: (0, i))]
                + [resident(a) for a in tparams])

    outT = pl.pallas_call(
        encoder_flows_kernel,
        out_shape=jax.ShapeDtypeStruct((rnn_size, n_pad), jnp.float32),
        grid=(num_tiles,),
        in_specs=in_specs,
        out_specs=pl.BlockSpec((rnn_size, tile), lambda i: (0, i)),
        compiler_params=pltpu.CompilerParams(
            dimension_semantics=("parallel",)),
    )(AT, xT, *tparams)

    out = outT[:, :N].T.reshape(batch_size, k, rnn_size)
    return out, 1


# ---------------------------------------------------------------------------
# Pure-JAX reference (faithful to the PyTorch semantics), for correctness check
# ---------------------------------------------------------------------------
def reference_forward(flow_matrix, params):
    batch_size, k, p = flow_matrix.shape
    N = batch_size * k
    x = flow_matrix.reshape(N, p).astype(jnp.float32)
    A = np.zeros((N, N), dtype=np.float32)
    for b in range(1, k):
        A[b, :b] = 1.0 / b
    A = jnp.asarray(A)
    for i in range(4):
        wl, bl, wr = params[3 * i], params[3 * i + 1], params[3 * i + 2]
        out = A @ x @ wl + bl + x @ wr
        norm = jnp.sqrt(jnp.sum(out * out, axis=-1, keepdims=True))
        x = out / jnp.maximum(norm, 1e-12)
    x = jnp.maximum(x, 0.0)
    return x.reshape(batch_size, k, -1)


if __name__ == "__main__":
    k = 8
    problem_size = k            # flow matrix is (batch, k, k)
    intermediate_size = 16
    rnn_size = 32

    key = jax.random.PRNGKey(0)
    key, kx = jax.random.split(key)
    params = init_params(key, problem_size, intermediate_size, rnn_size)

    # case 1: small, single lane tile
    batch_size = 2
    flow_matrix = jax.random.uniform(kx, (batch_size, k, problem_size),
                                     dtype=jnp.float32)
    out, flag = encoder_flows_forward(flow_matrix, params)
    out = jax.block_until_ready(out)
    ref = reference_forward(flow_matrix, params)
    assert out.shape == (batch_size, k, rnn_size)
    assert flag == 1
    np.testing.assert_allclose(np.asarray(out), np.asarray(ref),
                               rtol=2e-3, atol=2e-3)

    # case 2: exercises the multi-tile grid + lane-padding path
    batch_size2 = 40            # N = 320 -> 2 tiles of 256 lanes (padded to 512)
    key, kx2 = jax.random.split(key)
    flow_matrix2 = jax.random.uniform(kx2, (batch_size2, k, problem_size),
                                      dtype=jnp.float32)
    out2, _ = encoder_flows_forward(flow_matrix2, params)
    out2 = jax.block_until_ready(out2)
    ref2 = reference_forward(flow_matrix2, params)
    np.testing.assert_allclose(np.asarray(out2), np.asarray(ref2),
                               rtol=2e-3, atol=2e-3)

    print("KERNEL_OK")
</pallas_src>

<mosaic_0001>
module attributes {stable_mosaic.version = 11 : i64} {
  func.func @encoder_flows_kernel(%arg0: i32, %arg1: memref<8x8xf32, #tpu.memory_space<vmem>>, %arg2: memref<8x128xf32, #tpu.memory_space<vmem>>, %arg3: memref<16x8xf32, #tpu.memory_space<vmem>>, %arg4: memref<16x8xf32, #tpu.memory_space<vmem>>, %arg5: memref<16x1xf32, #tpu.memory_space<vmem>>, %arg6: memref<32x16xf32, #tpu.memory_space<vmem>>, %arg7: memref<32x16xf32, #tpu.memory_space<vmem>>, %arg8: memref<32x1xf32, #tpu.memory_space<vmem>>, %arg9: memref<16x32xf32, #tpu.memory_space<vmem>>, %arg10: memref<16x32xf32, #tpu.memory_space<vmem>>, %arg11: memref<16x1xf32, #tpu.memory_space<vmem>>, %arg12: memref<32x16xf32, #tpu.memory_space<vmem>>, %arg13: memref<32x16xf32, #tpu.memory_space<vmem>>, %arg14: memref<32x1xf32, #tpu.memory_space<vmem>>, %arg15: memref<32x128xf32, #tpu.memory_space<vmem>>) attributes {dimension_semantics = [#tpu.dimension_semantics<parallel>], iteration_bounds = array<i64: 1>, scalar_prefetch = 0 : i64, scratch_operands = 0 : i64, tpu.core_type = #tpu.core_type<tc>, window_params = [{pipeline_mode = #tpu.pipeline_mode<synchronous>, transform_indices = @transform_0, window_bounds = array<i64: 8, 8>}, {transform_indices = @transform_1, window_bounds = array<i64: 8, 128>}, {pipeline_mode = #tpu.pipeline_mode<synchronous>, transform_indices = @transform_2, window_bounds = array<i64: 16, 8>}, {pipeline_mode = #tpu.pipeline_mode<synchronous>, transform_indices = @transform_3, window_bounds = array<i64: 16, 8>}, {pipeline_mode = #tpu.pipeline_mode<synchronous>, transform_indices = @transform_4, window_bounds = array<i64: 16, 1>}, {pipeline_mode = #tpu.pipeline_mode<synchronous>, transform_indices = @transform_5, window_bounds = array<i64: 32, 16>}, {pipeline_mode = #tpu.pipeline_mode<synchronous>, transform_indices = @transform_6, window_bounds = array<i64: 32, 16>}, {pipeline_mode = #tpu.pipeline_mode<synchronous>, transform_indices = @transform_7, window_bounds = array<i64: 32, 1>}, {pipeline_mode = #tpu.pipeline_mode<synchronous>, transform_indices = @transform_8, window_bounds = array<i64: 16, 32>}, {pipeline_mode = #tpu.pipeline_mode<synchronous>, transform_indices = @transform_9, window_bounds = array<i64: 16, 32>}, {pipeline_mode = #tpu.pipeline_mode<synchronous>, transform_indices = @transform_10, window_bounds = array<i64: 16, 1>}, {pipeline_mode = #tpu.pipeline_mode<synchronous>, transform_indices = @transform_11, window_bounds = array<i64: 32, 16>}, {pipeline_mode = #tpu.pipeline_mode<synchronous>, transform_indices = @transform_12, window_bounds = array<i64: 32, 16>}, {pipeline_mode = #tpu.pipeline_mode<synchronous>, transform_indices = @transform_13, window_bounds = array<i64: 32, 1>}, {transform_indices = @transform_14, window_bounds = array<i64: 32, 128>}]} {
    %c0 = arith.constant 0 : index
    %c0_0 = arith.constant 0 : index
    %0 = vector.load %arg2[%c0, %c0_0] : memref<8x128xf32, #tpu.memory_space<vmem>>, vector<8x128xf32>
    %c0_1 = arith.constant 0 : index
    %c0_2 = arith.constant 0 : index
    %1 = vector.load %arg4[%c0_1, %c0_2] : memref<16x8xf32, #tpu.memory_space<vmem>>, vector<16x8xf32>
    %cst = arith.constant dense<0.000000e+00> : vector<16x128xf32>
    %2 = tpu.matmul %1, %0, %cst {dimension_numbers = #tpu.dot_dimension_numbers<[1], [0], [0], [1], [0, 0, 1, 1], [], []>} : vector<16x8xf32>, vector<8x128xf32>, vector<16x128xf32> -> vector<16x128xf32>
    %c0_3 = arith.constant 0 : index
    %c0_4 = arith.constant 0 : index
    %3 = vector.load %arg5[%c0_3, %c0_4] : memref<16x1xf32, #tpu.memory_space<vmem>>, vector<16x1xf32>
    %4 = vector.broadcast %3 : vector<16x1xf32> to vector<16x128xf32>
    %5 = arith.addf %2, %4 : vector<16x128xf32>
    %6 = arith.mulf %5, %5 : vector<16x128xf32>
    %cst_5 = arith.constant dense<0.000000e+00> : vector<128xf32>
    %7 = vector.multi_reduction <add>, %6, %cst_5 [0] : vector<16x128xf32> to vector<128xf32>
    %8 = vector.shape_cast %7 : vector<128xf32> to vector<1x128xf32>
    %cst_6 = arith.constant 1.000000e-24 : f32
    %9 = vector.broadcast %cst_6 : f32 to vector<1x128xf32>
    %10 = arith.maximumf %8, %9 : vector<1x128xf32>
    %11 = math.rsqrt %10 : vector<1x128xf32>
    %12 = vector.broadcast %11 : vector<1x128xf32> to vector<16x128xf32>
    %13 = arith.mulf %5, %12 : vector<16x128xf32>
    %c0_7 = arith.constant 0 : index
    %c0_8 = arith.constant 0 : index
    %14 = vector.load %arg7[%c0_7, %c0_8] : memref<32x16xf32, #tpu.memory_space<vmem>>, vector<32x16xf32>
    %cst_9 = arith.constant dense<0.000000e+00> : vector<32x128xf32>
    %15 = tpu.matmul %14, %13, %cst_9 {dimension_numbers = #tpu.dot_dimension_numbers<[1], [0], [0], [1], [0, 0, 1, 1], [], []>} : vector<32x16xf32>, vector<16x128xf32>, vector<32x128xf32> -> vector<32x128xf32>
    %c0_10 = arith.constant 0 : index
    %c0_11 = arith.constant 0 : index
    %16 = vector.load %arg8[%c0_10, %c0_11] : memref<32x1xf32, #tpu.memory_space<vmem>>, vector<32x1xf32>
    %17 = vector.broadcast %16 : vector<32x1xf32> to vector<32x128xf32>
    %18 = arith.addf %15, %17 : vector<32x128xf32>
    %19 = arith.mulf %18, %18 : vector<32x128xf32>
    %cst_12 = arith.constant dense<0.000000e+00> : vector<128xf32>
    %20 = vector.multi_reduction <add>, %19, %cst_12 [0] : vector<32x128xf32> to vector<128xf32>
    %21 = vector.shape_cast %20 : vector<128xf32> to vector<1x128xf32>
    %cst_13 = arith.constant 1.000000e-24 : f32
    %22 = vector.broadcast %cst_13 : f32 to vector<1x128xf32>
    %23 = arith.maximumf %21, %22 : vector<1x128xf32>
    %24 = math.rsqrt %23 : vector<1x128xf32>
    %25 = vector.broadcast %24 : vector<1x128xf32> to vector<32x128xf32>
    %26 = arith.mulf %18, %25 : vector<32x128xf32>
    %c0_14 = arith.constant 0 : index
    %c0_15 = arith.constant 0 : index
    %27 = vector.load %arg10[%c0_14, %c0_15] : memref<16x32xf32, #tpu.memory_space<vmem>>, vector<16x32xf32>
    %cst_16 = arith.constant dense<0.000000e+00> : vector<16x128xf32>
    %28 = tpu.matmul %27, %26, %cst_16 {dimension_numbers = #tpu.dot_dimension_numbers<[1], [0], [0], [1], [0, 0, 1, 1], [], []>} : vector<16x32xf32>, vector<32x128xf32>, vector<16x128xf32> -> vector<16x128xf32>
    %c0_17 = arith.constant 0 : index
    %c0_18 = arith.constant 0 : index
    %29 = vector.load %arg11[%c0_17, %c0_18] : memref<16x1xf32, #tpu.memory_space<vmem>>, vector<16x1xf32>
    %30 = vector.broadcast %29 : vector<16x1xf32> to vector<16x128xf32>
    %31 = arith.addf %28, %30 : vector<16x128xf32>
    %32 = arith.mulf %31, %31 : vector<16x128xf32>
    %cst_19 = arith.constant dense<0.000000e+00> : vector<128xf32>
    %33 = vector.multi_reduction <add>, %32, %cst_19 [0] : vector<16x128xf32> to vector<128xf32>
    %34 = vector.shape_cast %33 : vector<128xf32> to vector<1x128xf32>
    %cst_20 = arith.constant 1.000000e-24 : f32
    %35 = vector.broadcast %cst_20 : f32 to vector<1x128xf32>
    %36 = arith.maximumf %34, %35 : vector<1x128xf32>
    %37 = math.rsqrt %36 : vector<1x128xf32>
    %38 = vector.broadcast %37 : vector<1x128xf32> to vector<16x128xf32>
    %39 = arith.mulf %31, %38 : vector<16x128xf32>
    %c0_21 = arith.constant 0 : index
    %c0_22 = arith.constant 0 : index
    %40 = vector.load %arg13[%c0_21, %c0_22] : memref<32x16xf32, #tpu.memory_space<vmem>>, vector<32x16xf32>
    %cst_23 = arith.constant dense<0.000000e+00> : vector<32x128xf32>
    %41 = tpu.matmul %40, %39, %cst_23 {dimension_numbers = #tpu.dot_dimension_numbers<[1], [0], [0], [1], [0, 0, 1, 1], [], []>} : vector<32x16xf32>, vector<16x128xf32>, vector<32x128xf32> -> vector<32x128xf32>
    %c0_24 = arith.constant 0 : index
    %c0_25 = arith.constant 0 : index
    %42 = vector.load %arg14[%c0_24, %c0_25] : memref<32x1xf32, #tpu.memory_space<vmem>>, vector<32x1xf32>
    %43 = vector.broadcast %42 : vector<32x1xf32> to vector<32x128xf32>
    %44 = arith.addf %41, %43 : vector<32x128xf32>
    %45 = arith.mulf %44, %44 : vector<32x128xf32>
    %cst_26 = arith.constant dense<0.000000e+00> : vector<128xf32>
    %46 = vector.multi_reduction <add>, %45, %cst_26 [0] : vector<32x128xf32> to vector<128xf32>
    %47 = vector.shape_cast %46 : vector<128xf32> to vector<1x128xf32>
    %cst_27 = arith.constant 1.000000e-24 : f32
    %48 = vector.broadcast %cst_27 : f32 to vector<1x128xf32>
    %49 = arith.maximumf %47, %48 : vector<1x128xf32>
    %50 = math.rsqrt %49 : vector<1x128xf32>
    %51 = vector.broadcast %50 : vector<1x128xf32> to vector<32x128xf32>
    %52 = arith.mulf %44, %51 : vector<32x128xf32>
    %cst_28 = arith.constant 0.000000e+00 : f32
    %53 = vector.broadcast %cst_28 : f32 to vector<32x128xf32>
    %54 = arith.maximumf %52, %53 : vector<32x128xf32>
    %c0_29 = arith.constant 0 : index
    %c0_30 = arith.constant 0 : index
    %55 = vector.load %arg15[%c0_29, %c0_30] : memref<32x128xf32, #tpu.memory_space<vmem>>, vector<32x128xf32>
    tpu.vector_store %arg15[%c0_29, %c0_30], %54 {strides = array<i32>} : memref<32x128xf32, #tpu.memory_space<vmem>>, vector<32x128xf32>,
    %c0_i32 = arith.constant 0 : i32
    %56 = arith.cmpi eq, %arg0, %c0_i32 : i32
    %57 = arith.extui %56 : i1 to i32
    %c0_i32_31 = arith.constant 0 : i32
    %58 = arith.cmpi ne, %57, %c0_i32_31 : i32
    scf.if %58 {
      %c0_32 = arith.constant 0 : index
      %c0_33 = arith.constant 0 : index
      %59 = vector.load %arg2[%c0_32, %c0_33] : memref<8x128xf32, #tpu.memory_space<vmem>>, vector<8x8xf32>
      %c0_34 = arith.constant 0 : index
      %c0_35 = arith.constant 0 : index
      %60 = vector.load %arg1[%c0_34, %c0_35] : memref<8x8xf32, #tpu.memory_space<vmem>>, vector<8x8xf32>
      %cst_36 = arith.constant dense<0.000000e+00> : vector<8x8xf32>
      %61 = tpu.matmul %59, %60, %cst_36 {dimension_numbers = #tpu.dot_dimension_numbers<[1], [0], [0], [1], [0, 0, 1, 1], [], []>} : vector<8x8xf32>, vector<8x8xf32>, vector<8x8xf32> -> vector<8x8xf32>
      %c0_37 = arith.constant 0 : index
      %c0_38 = arith.constant 0 : index
      %62 = vector.load %arg3[%c0_37, %c0_38] : memref<16x8xf32, #tpu.memory_space<vmem>>, vector<16x8xf32>
      %cst_39 = arith.constant dense<0.000000e+00> : vector<16x8xf32>
      %63 = tpu.matmul %62, %61, %cst_39 {dimension_numbers = #tpu.dot_dimension_numbers<[1], [0], [0], [1], [0, 0, 1, 1], [], []>} : vector<16x8xf32>, vector<8x8xf32>, vector<16x8xf32> -> vector<16x8xf32>
      %c0_40 = arith.constant 0 : index
      %c0_41 = arith.constant 0 : index
      %64 = vector.load %arg4[%c0_40, %c0_41] : memref<16x8xf32, #tpu.memory_space<vmem>>, vector<16x8xf32>
      %cst_42 = arith.constant dense<0.000000e+00> : vector<16x8xf32>
      %65 = tpu.matmul %64, %59, %cst_42 {dimension_numbers = #tpu.dot_dimension_numbers<[1], [0], [0], [1], [0, 0, 1, 1], [], []>} : vector<16x8xf32>, vector<8x8xf32>, vector<16x8xf32> -> vector<16x8xf32>
      %66 = arith.addf %63, %65 : vector<16x8xf32>
      %c0_43 = arith.constant 0 : index
      %c0_44 = arith.constant 0 : index
      %67 = vector.load %arg5[%c0_43, %c0_44] : memref<16x1xf32, #tpu.memory_space<vmem>>, vector<16x1xf32>
      %68 = vector.broadcast %67 : vector<16x1xf32> to vector<16x8xf32>
      %69 = arith.addf %66, %68 : vector<16x8xf32>
      %70 = arith.mulf %69, %69 : vector<16x8xf32>
      %cst_45 = arith.constant dense<0.000000e+00> : vector<8xf32>
      %71 = vector.multi_reduction <add>, %70, %cst_45 [0] : vector<16x8xf32> to vector<8xf32>
      %72 = vector.shape_cast %71 : vector<8xf32> to vector<1x8xf32>
      %cst_46 = arith.constant 1.000000e-24 : f32
      %73 = vector.broadcast %cst_46 : f32 to vector<1x8xf32>
      %74 = arith.maximumf %72, %73 : vector<1x8xf32>
      %75 = math.rsqrt %74 : vector<1x8xf32>
      %76 = vector.broadcast %75 : vector<1x8xf32> to vector<16x8xf32>
      %77 = arith.mulf %69, %76 : vector<16x8xf32>
      %c0_47 = arith.constant 0 : index
      %c0_48 = arith.constant 0 : index
      %78 = vector.load %arg1[%c0_47, %c0_48] : memref<8x8xf32, #tpu.memory_space<vmem>>, vector<8x8xf32>
      %cst_49 = arith.constant dense<0.000000e+00> : vector<16x8xf32>
      %79 = tpu.matmul %77, %78, %cst_49 {dimension_numbers = #tpu.dot_dimension_numbers<[1], [0], [0], [1], [0, 0, 1, 1], [], []>} : vector<16x8xf32>, vector<8x8xf32>, vector<16x8xf32> -> vector<16x8xf32>
      %c0_50 = arith.constant 0 : index
      %c0_51 = arith.constant 0 : index
      %80 = vector.load %arg6[%c0_50, %c0_51] : memref<32x16xf32, #tpu.memory_space<vmem>>, vector<32x16xf32>
      %cst_52 = arith.constant dense<0.000000e+00> : vector<32x8xf32>
      %81 = tpu.matmul %80, %79, %cst_52 {dimension_numbers = #tpu.dot_dimension_numbers<[1], [0], [0], [1], [0, 0, 1, 1], [], []>} : vector<32x16xf32>, vector<16x8xf32>, vector<32x8xf32> -> vector<32x8xf32>
      %c0_53 = arith.constant 0 : index
      %c0_54 = arith.constant 0 : index
      %82 = vector.load %arg7[%c0_53, %c0_54] : memref<32x16xf32, #tpu.memory_space<vmem>>, vector<32x16xf32>
      %cst_55 = arith.constant dense<0.000000e+00> : vector<32x8xf32>
      %83 = tpu.matmul %82, %77, %cst_55 {dimension_numbers = #tpu.dot_dimension_numbers<[1], [0], [0], [1], [0, 0, 1, 1], [], []>} : vector<32x16xf32>, vector<16x8xf32>, vector<32x8xf32> -> vector<32x8xf32>
      %84 = arith.addf %81, %83 : vector<32x8xf32>
      %c0_56 = arith.constant 0 : index
      %c0_57 = arith.constant 0 : index
      %85 = vector.load %arg8[%c0_56, %c0_57] : memref<32x1xf32, #tpu.memory_space<vmem>>, vector<32x1xf32>
      %86 = vector.broadcast %85 : vector<32x1xf32> to vector<32x8xf32>
      %87 = arith.addf %84, %86 : vector<32x8xf32>
      %88 = arith.mulf %87, %87 : vector<32x8xf32>
      %cst_58 = arith.constant dense<0.000000e+00> : vector<8xf32>
      %89 = vector.multi_reduction <add>, %88, %cst_58 [0] : vector<32x8xf32> to vector<8xf32>
      %90 = vector.shape_cast %89 : vector<8xf32> to vector<1x8xf32>
      %cst_59 = arith.constant 1.000000e-24 : f32
      %91 = vector.broadcast %cst_59 : f32 to vector<1x8xf32>
      %92 = arith.maximumf %90, %91 : vector<1x8xf32>
      %93 = math.rsqrt %92 : vector<1x8xf32>
      %94 = vector.broadcast %93 : vector<1x8xf32> to vector<32x8xf32>
      %95 = arith.mulf %87, %94 : vector<32x8xf32>
      %c0_60 = arith.constant 0 : index
      %c0_61 = arith.constant 0 : index
      %96 = vector.load %arg1[%c0_60, %c0_61] : memref<8x8xf32, #tpu.memory_space<vmem>>, vector<8x8xf32>
      %cst_62 = arith.constant dense<0.000000e+00> : vector<32x8xf32>
      %97 = tpu.matmul %95, %96, %cst_62 {dimension_numbers = #tpu.dot_dimension_numbers<[1], [0], [0], [1], [0, 0, 1, 1], [], []>} : vector<32x8xf32>, vector<8x8xf32>, vector<32x8xf32> -> vector<32x8xf32>
      %c0_63 = arith.constant 0 : index
      %c0_64 = arith.constant 0 : index
      %98 = vector.load %arg9[%c0_63, %c0_64] : memref<16x32xf32, #tpu.memory_space<vmem>>, vector<16x32xf32>
      %cst_65 = arith.constant dense<0.000000e+00> : vector<16x8xf32>
      %99 = tpu.matmul %98, %97, %cst_65 {dimension_numbers = #tpu.dot_dimension_numbers<[1], [0], [0], [1], [0, 0, 1, 1], [], []>} : vector<16x32xf32>, vector<32x8xf32>, vector<16x8xf32> -> vector<16x8xf32>
      %c0_66 = arith.constant 0 : index
      %c0_67 = arith.constant 0 : index
      %100 = vector.load %arg10[%c0_66, %c0_67] : memref<16x32xf32, #tpu.memory_space<vmem>>, vector<16x32xf32>
      %cst_68 = arith.constant dense<0.000000e+00> : vector<16x8xf32>
      %101 = tpu.matmul %100, %95, %cst_68 {dimension_numbers = #tpu.dot_dimension_numbers<[1], [0], [0], [1], [0, 0, 1, 1], [], []>} : vector<16x32xf32>, vector<32x8xf32>, vector<16x8xf32> -> vector<16x8xf32>
      %102 = arith.addf %99, %101 : vector<16x8xf32>
      %c0_69 = arith.constant 0 : index
      %c0_70 = arith.constant 0 : index
      %103 = vector.load %arg11[%c0_69, %c0_70] : memref<16x1xf32, #tpu.memory_space<vmem>>, vector<16x1xf32>
      %104 = vector.broadcast %103 : vector<16x1xf32> to vector<16x8xf32>
      %105 = arith.addf %102, %104 : vector<16x8xf32>
      %106 = arith.mulf %105, %105 : vector<16x8xf32>
      %cst_71 = arith.constant dense<0.000000e+00> : vector<8xf32>
      %107 = vector.multi_reduction <add>, %106, %cst_71 [0] : vector<16x8xf32> to vector<8xf32>
      %108 = vector.shape_cast %107 : vector<8xf32> to vector<1x8xf32>
      %cst_72 = arith.constant 1.000000e-24 : f32
      %109 = vector.broadcast %cst_72 : f32 to vector<1x8xf32>
      %110 = arith.maximumf %108, %109 : vector<1x8xf32>
      %111 = math.rsqrt %110 : vector<1x8xf32>
      %112 = vector.broadcast %111 : vector<1x8xf32> to vector<16x8xf32>
      %113 = arith.mulf %105, %112 : vector<16x8xf32>
      %c0_73 = arith.constant 0 : index
      %c0_74 = arith.constant 0 : index
      %114 = vector.load %arg1[%c0_73, %c0_74] : memref<8x8xf32, #tpu.memory_space<vmem>>, vector<8x8xf32>
      %cst_75 = arith.constant dense<0.000000e+00> : vector<16x8xf32>
      %115 = tpu.matmul %113, %114, %cst_75 {dimension_numbers = #tpu.dot_dimension_numbers<[1], [0], [0], [1], [0, 0, 1, 1], [], []>} : vector<16x8xf32>, vector<8x8xf32>, vector<16x8xf32> -> vector<16x8xf32>
      %c0_76 = arith.constant 0 : index
      %c0_77 = arith.constant 0 : index
      %116 = vector.load %arg12[%c0_76, %c0_77] : memref<32x16xf32, #tpu.memory_space<vmem>>, vector<32x16xf32>
      %cst_78 = arith.constant dense<0.000000e+00> : vector<32x8xf32>
      %117 = tpu.matmul %116, %115, %cst_78 {dimension_numbers = #tpu.dot_dimension_numbers<[1], [0], [0], [1], [0, 0, 1, 1], [], []>} : vector<32x16xf32>, vector<16x8xf32>, vector<32x8xf32> -> vector<32x8xf32>
      %c0_79 = arith.constant 0 : index
      %c0_80 = arith.constant 0 : index
      %118 = vector.load %arg13[%c0_79, %c0_80] : memref<32x16xf32, #tpu.memory_space<vmem>>, vector<32x16xf32>
      %cst_81 = arith.constant dense<0.000000e+00> : vector<32x8xf32>
      %119 = tpu.matmul %118, %113, %cst_81 {dimension_numbers = #tpu.dot_dimension_numbers<[1], [0], [0], [1], [0, 0, 1, 1], [], []>} : vector<32x16xf32>, vector<16x8xf32>, vector<32x8xf32> -> vector<32x8xf32>
      %120 = arith.addf %117, %119 : vector<32x8xf32>
      %c0_82 = arith.constant 0 : index
      %c0_83 = arith.constant 0 : index
      %121 = vector.load %arg14[%c0_82, %c0_83] : memref<32x1xf32, #tpu.memory_space<vmem>>, vector<32x1xf32>
      %122 = vector.broadcast %121 : vector<32x1xf32> to vector<32x8xf32>
      %123 = arith.addf %120, %122 : vector<32x8xf32>
      %124 = arith.mulf %123, %123 : vector<32x8xf32>
      %cst_84 = arith.constant dense<0.000000e+00> : vector<8xf32>
      %125 = vector.multi_reduction <add>, %124, %cst_84 [0] : vector<32x8xf32> to vector<8xf32>
      %126 = vector.shape_cast %125 : vector<8xf32> to vector<1x8xf32>
      %cst_85 = arith.constant 1.000000e-24 : f32
      %127 = vector.broadcast %cst_85 : f32 to vector<1x8xf32>
      %128 = arith.maximumf %126, %127 : vector<1x8xf32>
      %129 = math.rsqrt %128 : vector<1x8xf32>
      %130 = vector.broadcast %129 : vector<1x8xf32> to vector<32x8xf32>
      %131 = arith.mulf %123, %130 : vector<32x8xf32>
      %cst_86 = arith.constant 0.000000e+00 : f32
      %132 = vector.broadcast %cst_86 : f32 to vector<32x8xf32>
      %133 = arith.maximumf %131, %132 : vector<32x8xf32>
      %c0_87 = arith.constant 0 : index
      %c0_88 = arith.constant 0 : index
      %134 = vector.load %arg15[%c0_87, %c0_88] : memref<32x128xf32, #tpu.memory_space<vmem>>, vector<32x8xf32>
      tpu.vector_store %arg15[%c0_87, %c0_88], %133 {strides = array<i32>} : memref<32x128xf32, #tpu.memory_space<vmem>>, vector<32x8xf32>,
    } else {
    }
    return
  }
  func.func @transform_0(%arg0: i32) -> (i32, i32) {
    %c0_i32 = arith.constant 0 : i32
    %c0_i32_0 = arith.constant 0 : i32
    %c0_i32_1 = arith.constant 0 : i32
    return %c0_i32, %c0_i32_0 : i32, i32
  }
  func.func @transform_1(%arg0: i32) -> (i32, i32) {
    %c0_i32 = arith.constant 0 : i32
    %c0_i32_0 = arith.constant 0 : i32
    return %c0_i32, %arg0 : i32, i32
  }
  func.func @transform_2(%arg0: i32) -> (i32, i32) {
    %c0_i32 = arith.constant 0 : i32
    %c0_i32_0 = arith.constant 0 : i32
    %c0_i32_1 = arith.constant 0 : i32
    return %c0_i32, %c0_i32_0 : i32, i32
  }
  func.func @transform_3(%arg0: i32) -> (i32, i32) {
    %c0_i32 = arith.constant 0 : i32
    %c0_i32_0 = arith.constant 0 : i32
    %c0_i32_1 = arith.constant 0 : i32
    return %c0_i32, %c0_i32_0 : i32, i32
  }
  func.func @transform_4(%arg0: i32) -> (i32, i32) {
    %c0_i32 = arith.constant 0 : i32
    %c0_i32_0 = arith.constant 0 : i32
    %c0_i32_1 = arith.constant 0 : i32
    return %c0_i32, %c0_i32_0 : i32, i32
  }
  func.func @transform_5(%arg0: i32) -> (i32, i32) {
    %c0_i32 = arith.constant 0 : i32
    %c0_i32_0 = arith.constant 0 : i32
    %c0_i32_1 = arith.constant 0 : i32
    return %c0_i32, %c0_i32_0 : i32, i32
  }
  func.func @transform_6(%arg0: i32) -> (i32, i32) {
    %c0_i32 = arith.constant 0 : i32
    %c0_i32_0 = arith.constant 0 : i32
    %c0_i32_1 = arith.constant 0 : i32
    return %c0_i32, %c0_i32_0 : i32, i32
  }
  func.func @transform_7(%arg0: i32) -> (i32, i32) {
    %c0_i32 = arith.constant 0 : i32
    %c0_i32_0 = arith.constant 0 : i32
    %c0_i32_1 = arith.constant 0 : i32
    return %c0_i32, %c0_i32_0 : i32, i32
  }
  func.func @transform_8(%arg0: i32) -> (i32, i32) {
    %c0_i32 = arith.constant 0 : i32
    %c0_i32_0 = arith.constant 0 : i32
    %c0_i32_1 = arith.constant 0 : i32
    return %c0_i32, %c0_i32_0 : i32, i32
  }
  func.func @transform_9(%arg0: i32) -> (i32, i32) {
    %c0_i32 = arith.constant 0 : i32
    %c0_i32_0 = arith.constant 0 : i32
    %c0_i32_1 = arith.constant 0 : i32
    return %c0_i32, %c0_i32_0 : i32, i32
  }
  func.func @transform_10(%arg0: i32) -> (i32, i32) {
    %c0_i32 = arith.constant 0 : i32
    %c0_i32_0 = arith.constant 0 : i32
    %c0_i32_1 = arith.constant 0 : i32
    return %c0_i32, %c0_i32_0 : i32, i32
  }
  func.func @transform_11(%arg0: i32) -> (i32, i32) {
    %c0_i32 = arith.constant 0 : i32
    %c0_i32_0 = arith.constant 0 : i32
    %c0_i32_1 = arith.constant 0 : i32
    return %c0_i32, %c0_i32_0 : i32, i32
  }
  func.func @transform_12(%arg0: i32) -> (i32, i32) {
    %c0_i32 = arith.constant 0 : i32
    %c0_i32_0 = arith.constant 0 : i32
    %c0_i32_1 = arith.constant 0 : i32
    return %c0_i32, %c0_i32_0 : i32, i32
  }
  func.func @transform_13(%arg0: i32) -> (i32, i32) {
    %c0_i32 = arith.constant 0 : i32
    %c0_i32_0 = arith.constant 0 : i32
    %c0_i32_1 = arith.constant 0 : i32
    return %c0_i32, %c0_i32_0 : i32, i32
  }
  func.func @transform_14(%arg0: i32) -> (i32, i32) {
    %c0_i32 = arith.constant 0 : i32
    %c0_i32_0 = arith.constant 0 : i32
    return %c0_i32, %arg0 : i32, i32
  }
}

</mosaic_0001>

<bundles_post_ra>
// kernel: tpu_custom_call.1
= control target key start
LH: loop header
LB: loop body
LE: loop exit
PB: predicated region body
PF: predicated region fallthrough
CT: control target
= control target key end

     0   :  { %vm63_vm0 = vcmask 64512   ;;  %v2120_v4 = vmov 0   ;;  %s2464_s0 = inlined_call_operand.vmem [shape: f32[8,8], index: 0, kind: input, shape index: {}]   ;;  %s2465_s1 = inlined_call_operand.vmem [shape: f32[8,128], index: 1, kind: input, shape index: {}]   ;;  %s2466_s2 = inlined_call_operand.vmem [shape: f32[16,8], index: 2, kind: input, shape index: {}]   ;;  %s2467_s3 = inlined_call_operand.vmem [shape: f32[16,8], index: 3, kind: input, shape index: {}]   ;;  %s2468_s4 = inlined_call_operand.vmem [shape: f32[16,1], index: 4, kind: input, shape index: {}]   ;;  %s2469_s5 = inlined_call_operand.vmem [shape: f32[32,16], index: 5, kind: input, shape index: {}]   ;;  %s2470_s6 = inlined_call_operand.vmem [shape: f32[32,16], index: 6, kind: input, shape index: {}]   ;;  %s2471_s7 = inlined_call_operand.vmem [shape: f32[32,1], index: 7, kind: input, shape index: {}]   ;;  %s2472_s8 = inlined_call_operand.vmem [shape: f32[16,32], index: 8, kind: input, shape index: {}]   ;;  %s2473_s9 = inlined_call_operand.vmem [shape: f32[16,32], index: 9, kind: input, shape index: {}]   ;;  %s2474_s10 = inlined_call_operand.vmem [shape: f32[16,1], index: 10, kind: input, shape index: {}]   ;;  %s2475_s11 = inlined_call_operand.vmem [shape: f32[32,16], index: 11, kind: input, shape index: {}]   ;;  %s2476_s12 = inlined_call_operand.vmem [shape: f32[32,16], index: 12, kind: input, shape index: {}]   ;;  %s2477_s13 = inlined_call_operand.vmem [shape: f32[32,1], index: 13, kind: input, shape index: {}]   ;;  %s2478_s14 = inlined_call_operand.hbm [shape: f32[32,128], index: 14, kind: output, shape index: {}]  }
   0x1   :  { %v2204_v0 = vld [vmem:[%s2465_s1] sm:$0xff]  ;;  %v2214_v2 = vld [vmem:[%s2467_s3 + $0x8] sm:$0xff]  ;;  %2080 = vset.pattern.permute.xlu0 %v2120_v4 }
   0x2   :  { %v2209_v1 = vld [vmem:[%s2467_s3] sm:$0xff]  ;;  %1943 = vmatprep.subr.mxu0 %v2204_v0 }
   0x3   :  { %1945 = vmatprep.mubr.msk.f32.mxu0 %vm63_vm0, %v2209_v1  ;;  %v51_v3 = vld [vmem:[%s2468_s4] sm:$0xff]  ;;  %1944 = vmatpush3.msra.mxu0 %v2204_v0 }
   0x4   :  { %1946 = vmatmul.mubr.msk.f32.vlgmr.msra.gmra.mxu0 %vm63_vm0, %v2214_v2  ;;  %55 = vperm.xlu0 %2080, %v51_v3  }
   0x5   :  { %19 = vsyncpa [#allocation3], 0  ;;  %v52_v5 = vld [vmem:[%s2468_s4 + $0x8] sm:$0xff]  ;;  %v1121_v6 = vld [vmem:[%s2471_s7] sm:$0xff]  ;;  %2081 = vset.pattern.permute.xlu1 %v2120_v4  ;;  %vm186_vm1 = vcmask 130048   ;;  %vm317_vm2 = vcmask 261120  }
   0x6   :  { %168 = vperm.xlu1 %2081, %v1121_v6   ;;  %v164_v7 = vld [vmem:[%s2471_s7 + $0x10] sm:$0xff]  ;;  %v305_v8 = vld [vmem:[%s2474_s10] sm:$0xff]  ;;  %v419_v11 = vld [vmem:[%s2477_s13 + $0x18] sm:$0xff]  ;;  %vm2122_vm3 = vmmov 0  }
   0x7   :  { %v416_v9 = vld [vmem:[%s2477_s13] sm:$0xff]  ;;  %v418_v10 = vld [vmem:[%s2477_s13 + $0x10] sm:$0xff]  ;;  %v163_v13 = vld [vmem:[%s2471_s7 + $0x8] sm:$0xff] }
   0x8   :  { %60 = vperm.xlu0 %2080, %v52_v5   ;;  %v2249_v12 = vld [vmem:[%s2470_s6] sm:$0xff]  ;;  %v165_v14 = vld [vmem:[%s2471_s7 + $0x18] sm:$0xff]  ;;  %v306_v15 = vld [vmem:[%s2474_s10 + $0x8] sm:$0xff] }
   0x9   :  { %1952 = vmatprep.mubr.msk.f32.mxu1 %vm186_vm1, %v2249_v12  ;;  %v417_v16 = vld [vmem:[%s2477_s13 + $0x8] sm:$0xff]  ;;  %v2273_v37 = vld [vmem:[%s2470_s6 + $0x10] sm:$0xff]  ;;  %v2282_v38 = vld [vmem:[%s2470_s6 + $0x18] sm:$0xff] }
   0xa   :  { %173 = vperm.xlu1 %2081, %v163_v13   ;;  %v2268_v36 = vld [vmem:[%s2470_s6 + $0x8] sm:$0xff]  ;;  %v2289_v39 = vld [vmem:[%s2473_s9] sm:$0xff] }
   0xb   :  { %1966 = vmatprep.mubr.msk.f32.mxu0 %vm317_vm2, %v2289_v39 }
   0xc   :  { %178 = vperm.xlu0 %2080, %v164_v7  }
   0xe   :  { %183 = vperm.xlu1 %2081, %v165_v14  }
  0x10   :  { %309 = vperm.xlu0 %2080, %v305_v8  }
  0x12   :  { %314 = vperm.xlu1 %2081, %v306_v15  }
  0x14   :  { %813 = vperm.xlu0 %2080, %v51_v3  }
  0x16   :  { %818 = vperm.xlu1 %2081, %v52_v5  }
  0x18   :  { %1127 = vperm.xlu0 %2080, %v1121_v6  }
  0x1a   :  { %1132 = vperm.xlu1 %2081, %v163_v13   ;;  %v2121_v13 = vmov 0.0  }
  0x1c   :  { %1137 = vperm.xlu0 %2080, %v164_v7  }
  0x1e   :  { %1142 = vperm.xlu1 %2081, %v165_v14   ;;  %v2319_v14 = vld [vmem:[%s2476_s12] sm:$0xff] }
  0x20   :  { %1439 = vperm.xlu0 %2080, %v305_v8  }
  0x22   :  { %1444 = vperm.xlu1 %2081, %v306_v15  }
  0x24   :  { %422 = vperm.xlu0 %2080, %v416_v9  }
  0x26   :  { %427 = vperm.xlu1 %2081, %v417_v16  }
  0x28   :  { %1753 = vperm.xlu0 %2080, %v416_v9  }
  0x2a   :  { %1758 = vperm.xlu1 %2081, %v417_v16  }
  0x2c   :  { %432 = vperm.xlu0 %2080, %v418_v10  }
  0x2e   :  { %1763 = vperm.xlu1 %2081, %v418_v10   ;;  %v2296_v10 = vld [vmem:[%s2473_s9 + $0x8] sm:$0xff] }
  0x30   :  { %437 = vperm.xlu0 %2080, %v419_v11  }
  0x32   :  { %1768 = vperm.xlu1 %2081, %v419_v11   ;;  %v2301_v11 = vld [vmem:[%s2464_s0] sm:$0xff] }
  0x7f   :  { %v56_v17 = vpop.permute.xlu0 %55 }
  0x81   :  { %v169_v40 = vpop.permute.xlu1 %168 }
  0x83   :  { %v61_v18 = vpop.permute.xlu0 %60 }
  0x85   :  { %v174_v41 = vpop.permute.xlu1 %173 }
  0x87   :  { %v179_v47 = vpop.permute.xlu0 %178 }
  0x89   :  { %v184_v49 = vpop.permute.xlu1 %183 }
  0x8d   :  { %v315_v15 = vpop.permute.xlu1 %314 }
  0xc4   :  { %v1947_v19 = vpop.f32.mrf.mxu0 }
  0xc5   :  { %v142_v20 = vadd.f32 %v1947_v19, %v61_v18 }
  0xc6   :  { %v136_v21 = vpop.f32.mrf.mxu0 }
  0xc7   :  { %v137_v22 = vadd.f32 %v136_v21, %v56_v17  ;;  %v146_v23 = vmul.f32 %v142_v20, %v142_v20  ;;  %v310_v17 = vpop.permute.xlu0 %309 }
  0xc9   :  { %v145_v24 = vmul.f32 %v137_v22, %v137_v22 }
  0xcb   :  { %v147_v25 = vadd.f32 %v146_v23, %v145_v24 }
  0xcd   :  { %v148_v26 = vrot.slane %v147_v25, 4 }
  0xcf   :  { %v149_v27 = vadd.f32 %v148_v26, %v147_v25 }
  0xd1   :  { %v150_v28 = vrot.slane %v149_v27, 2 }
  0xd3   :  { %v151_v29 = vadd.f32 %v150_v28, %v149_v27 }
  0xd5   :  { %v152_v30 = vrot.slane %v151_v29, 1 }
  0xd7   :  { %v153_v31 = vadd.f32 %v152_v30, %v151_v29 }
  0xd9   :  { %v154_v32 = vmax.f32 %v153_v31, 1e-24 }
  0xdb   :  { %2082 = vrsqrt.f32 %v154_v32 }
  0xe8   :  { %v2083_v33 = vpop.eup %2082 }
  0xe9   :  { %v157_v34 = vmul.f32 %v2083_v33, %v142_v20  ;;  %v156_v35 = vmul.f32 %v2083_v33, %v137_v22  ;;  %v2326_v33 = vld [vmem:[%s2476_s12 + $0x8] sm:$0xff] }
  0xeb   :  { %1948 = vmatprep.subr.mxu1 %v157_v34 }
  0xec   :  { %1949 = vmatpush3.msra.mxu1 %v157_v34  ;;  %v2331_v34 = vld [vmem:[%s2476_s12 + $0x10] sm:$0xff] }
  0xed   :  { %1950 = vmatprep.subr.mxu1 %v156_v35 }
  0xee   :  { %1951 = vmatpush3.msra.mxu1 %v156_v35  ;;  %v2340_v35 = vld [vmem:[%s2476_s12 + $0x18] sm:$0xff] }
  0xef   :  { %1953 = vmatmul.mubr.msk.f32.vlgmr.msra.gmra.mxu1 %vm186_vm1, %v2268_v36 }
  0xf0   :  { %1955 = vmatprep.mubr.msk.f32.mxu1 %vm186_vm1, %v2273_v37 }
  0xf3   :  { %1956 = vmatmul.mubr.msk.f32.gmra.mxu1 %vm186_vm1, %v2282_v38 }
  0xf4   :  { %1973 = vmatprep.mubr.msk.f32.mxu1 %vm186_vm1, %v2319_v14 }
 0x1af   :  { %v1954_v42 = vpop.f32.mrf.mxu1 }
 0x1b0   :  { %v271_v44 = vadd.f32 %v1954_v42, %v174_v41  ;;  %v644_v41 = vld [vmem:[%s2466_s2 + $0x8] sm:$0xff]  ;;  %v814_v42 = vpop.permute.xlu0 %813 }
 0x1b1   :  { %v265_v43 = vpop.f32.mrf.mxu1 }
 0x1b2   :  { %v266_v45 = vadd.f32 %v265_v43, %v169_v40  ;;  %v285_v51 = vmul.f32 %v271_v44, %v271_v44  ;;  %v643_v40 = vld [vmem:[%s2466_s2] sm:$0xff] }
 0x1b3   :  { %v1957_v46 = vpop.f32.mrf.mxu1 }
 0x1b4   :  { %v284_v48 = vmul.f32 %v266_v45, %v266_v45  ;;  %v281_v52 = vadd.f32 %v1957_v46, %v184_v49  ;;  %v2354_v43 = vpop.permute.xlu0 %1127 }
 0x1b5   :  { %v275_v50 = vpop.f32.mrf.mxu1 }
 0x1b6   :  { %v276_v53 = vadd.f32 %v275_v50, %v179_v47  ;;  %v288_v54 = vadd.f32 %v285_v51, %v284_v48  ;;  %v287_v56 = vmul.f32 %v281_v52, %v281_v52 }
 0x1b8   :  { %v286_v55 = vmul.f32 %v276_v53, %v276_v53 }
 0x1ba   :  { %v289_v57 = vadd.f32 %v288_v54, %v286_v55 }
 0x1bc   :  { %v290_v58 = vadd.f32 %v289_v57, %v287_v56 }
 0x1be   :  { %v291_v59 = vrot.slane %v290_v58, 4 }
 0x1c0   :  { %v292_v60 = vadd.f32 %v291_v59, %v290_v58 }
 0x1c2   :  { %v293_v61 = vrot.slane %v292_v60, 2 }
 0x1c4   :  { %v294_v62 = vadd.f32 %v293_v61, %v292_v60 }
 0x1c6   :  { %v295_v63 = vrot.slane %v294_v62, 1 }
 0x1c8   :  { %v296_v3 = vadd.f32 %v295_v63, %v294_v62 }
 0x1ca   :  { %v297_v4 = vmax.f32 %v296_v3, 1e-24 }
 0x1cc   :  { %2084 = vrsqrt.f32 %v297_v4 }
 0x1d9   :  { %v2085_v5 = vpop.eup %2084 }
 0x1da   :  { %v302_v6 = vmul.f32 %v2085_v5, %v281_v52  ;;  %v301_v7 = vmul.f32 %v2085_v5, %v276_v53  ;;  %v300_v8 = vmul.f32 %v2085_v5, %v271_v44  ;;  %v299_v9 = vmul.f32 %v2085_v5, %v266_v45  ;;  %v2356_v44 = vpop.permute.xlu0 %1137  ;;  %v819_v45 = vpop.permute.xlu1 %818 }
 0x1dc   :  { %1958 = vmatprep.subr.mxu0 %v302_v6 }
 0x1dd   :  { %1959 = vmatpush3.msra.mxu0 %v302_v6 }
 0x1de   :  { %1960 = vmatprep.subr.mxu0 %v301_v7  ;;  %v2358_v46 = vpop.permute.xlu0 %1439  ;;  %v2360_v47 = vpop.permute.xlu1 %1132 }
 0x1df   :  { %1961 = vmatpush3.msra.mxu0 %v301_v7 }
 0x1e0   :  { %1962 = vmatprep.subr.mxu0 %v300_v8 }
 0x1e1   :  { %1963 = vmatpush3.msra.mxu0 %v300_v8 }
 0x1e2   :  { %1964 = vmatprep.subr.mxu0 %v299_v9  ;;  %v423_v48 = vpop.permute.xlu0 %422  ;;  %v2362_v49 = vpop.permute.xlu1 %1142 }
 0x1e3   :  { %1965 = vmatpush3.msra.mxu0 %v299_v9 }
 0x1e4   :  { %1967 = vmatmul.mubr.msk.f32.vlgmr.msra.gmra.mxu0 %vm317_vm2, %v2296_v10  ;;  %1979 = vmatprep.subr.mxu0 %v2121_v13 }
 0x1e5   :  { %1980 = vmatpush3.msra.mxu0 %v2301_v11  ;;  %1981 = vmatprep.mubr.msk.f32.mxu0 %vm2122_vm3, %v2121_v13 }
 0x1e6   :  { %1984 = vmatprep.subr.mxu0 %v2204_v0  ;;  %v2364_v50 = vpop.permute.xlu0 %1753  ;;  %v2366_v51 = vpop.permute.xlu1 %1444 }
 0x1e8   :  { %1982 = vmatmul.mubr.msk.f32.vlgmr.msra.gmra.mxu0 %vm63_vm0, %v2204_v0 }
 0x1e9   :  { %1985 = vmatpush3.msra.mxu0 %v2204_v0  ;;  %1986 = vmatprep.mubr.msk.f32.mxu0 %vm63_vm0, %v2209_v1 }
 0x1ea   :  { %1994 = vmatprep.subr.mxu0 %v2301_v11  ;;  %v433_v52 = vpop.permute.xlu0 %432 }
 0x1ec   :  { %1987 = vmatmul.mubr.msk.f32.vlgmr.msra.gmra.mxu0 %vm63_vm0, %v2214_v2 }
 0x1ed   :  { %1995 = vmatpush3.msra.mxu0 %v2301_v11 }
 0x1ee   :  { %v438_v58 = vpop.permute.xlu0 %437 }
 0x2a4   :  { %v1968_v0 = vpop.f32.mrf.mxu0 }
 0x2a5   :  { %v396_v16 = vadd.f32 %v1968_v0, %v315_v15 }
 0x2a6   :  { %v390_v1 = vpop.f32.mrf.mxu0 }
 0x2a7   :  { %v391_v18 = vadd.f32 %v390_v1, %v310_v17  ;;  %v400_v20 = vmul.f32 %v396_v16, %v396_v16 }
 0x2a8   :  { %v639_v19 = vpop.f32.mrf.mxu0 }
 0x2a9   :  { %v399_v21 = vmul.f32 %v391_v18, %v391_v18 }
 0x2aa   :  { %v1983_v2 = vpop.f32.mrf.mxu0 }
 0x2ab   :  { %v401_v22 = vadd.f32 %v400_v20, %v399_v21 }
 0x2ac   :  { %v1988_v61 = vpop.f32.mrf.mxu0 }
 0x2ad   :  { %v402_v23 = vrot.slane %v401_v22, 4 }
 0x2ae   :  { %v719_v8 = vpop.f32.mrf.mxu0 }
 0x2af   :  { %v403_v24 = vadd.f32 %v402_v23, %v401_v22 }
 0x2b1   :  { %v404_v25 = vrot.slane %v403_v24, 2 }
 0x2b3   :  { %v405_v26 = vadd.f32 %v404_v25, %v403_v24 }
 0x2b5   :  { %v406_v27 = vrot.slane %v405_v26, 1 }
 0x2b7   :  { %v407_v28 = vadd.f32 %v406_v27, %v405_v26 }
 0x2b9   :  { %v408_v29 = vmax.f32 %v407_v28, 1e-24 }
 0x2bb   :  { %2086 = vrsqrt.f32 %v408_v29 }
 0x2c8   :  { %v2087_v30 = vpop.eup %2086 }
 0x2c9   :  { %v411_v31 = vmul.f32 %v2087_v30, %v396_v16  ;;  %v410_v32 = vmul.f32 %v2087_v30, %v391_v18 }
 0x2cb   :  { %1969 = vmatprep.subr.mxu1 %v411_v31 }
 0x2cc   :  { %1970 = vmatpush3.msra.mxu1 %v411_v31 }
 0x2cd   :  { %1971 = vmatprep.subr.mxu1 %v410_v32 }
 0x2ce   :  { %1972 = vmatpush3.msra.mxu1 %v410_v32 }
 0x2cf   :  { %1974 = vmatmul.mubr.msk.f32.vlgmr.msra.gmra.mxu1 %vm186_vm1, %v2326_v33  ;;  %1989 = vmatprep.subr.mxu1 %v639_v19 }
 0x2d0   :  { %1976 = vmatprep.mubr.msk.f32.mxu1 %vm186_vm1, %v2331_v34  ;;  %1990 = vmatpush3.msra.mxu1 %v639_v19 }
 0x2d3   :  { %1977 = vmatmul.mubr.msk.f32.gmra.mxu1 %vm186_vm1, %v2340_v35 }
 0x2d4   :  { %1991 = vmatprep.mubr.msk.f32.mxu1 %vm63_vm0, %v643_v40 }
 0x2d7   :  { %1992 = vmatmul.mubr.msk.f32.vlgmr.msra.gmra.mxu1 %vm63_vm0, %v644_v41 }
 0x2d8   :  { %2003 = vmatprep.mubr.msk.f32.mxu1 %vm186_vm1, %v2249_v12  ;;  %v428_v12 = vpop.permute.xlu1 %427 }
 0x38f   :  { %v1975_v53 = vpop.f32.mrf.mxu1 }
 0x390   :  { %v524_v55 = vadd.f32 %v1975_v53, %v428_v12 }
 0x391   :  { %v518_v54 = vpop.f32.mrf.mxu1 }
 0x392   :  { %v519_v56 = vadd.f32 %v518_v54, %v423_v48  ;;  %v538_v62 = vmul.f32 %v524_v55, %v524_v55 }
 0x393   :  { %v1978_v57 = vpop.f32.mrf.mxu1 }
 0x394   :  { %v537_v59 = vmul.f32 %v519_v56, %v519_v56  ;;  %v534_v63 = vadd.f32 %v1978_v57, %v438_v58 }
 0x395   :  { %v528_v60 = vpop.f32.mrf.mxu1 }
 0x396   :  { %v529_v3 = vadd.f32 %v528_v60, %v433_v52  ;;  %v541_v5 = vadd.f32 %v538_v62, %v537_v59  ;;  %v540_v13 = vmul.f32 %v534_v63, %v534_v63 }
 0x397   :  { %v1993_v4 = vpop.f32.mrf.mxu1 }
 0x398   :  { %v539_v6 = vmul.f32 %v529_v3, %v529_v3  ;;  %v806_v7 = vadd.f32 %v1993_v4, %v1988_v61 }
 0x399   :  { %v800_v9 = vpop.f32.mrf.mxu1 }
 0x39a   :  { %v542_v15 = vadd.f32 %v541_v5, %v539_v6  ;;  %v822_v0 = vadd.f32 %v819_v45, %v806_v7  ;;  %v801_v16 = vadd.f32 %v800_v9, %v719_v8 }
 0x39c   :  { %v543_v17 = vadd.f32 %v542_v15, %v540_v13  ;;  %v824_v1 = vmul.f32 %v822_v0, %v822_v0  ;;  %v821_v18 = vadd.f32 %v814_v42, %v801_v16 }
 0x39e   :  { %v544_v19 = vrot.slane %v543_v17, 4  ;;  %v823_v20 = vmul.f32 %v821_v18, %v821_v18  ;;  %v826_v2 = vsel %vm63_vm0, %v824_v1, 0.0 }
 0x3a0   :  { %v545_v21 = vadd.f32 %v544_v19, %v543_v17  ;;  %v825_v22 = vsel %vm63_vm0, %v823_v20, 0.0 }
 0x3a1   :  { %v827_v23 = vadd.f32 %v826_v2, %v825_v22 }
 0x3a2   :  { %v546_v24 = vrot.slane %v545_v21, 2 }
 0x3a3   :  { %v828_v25 = vrot.slane %v827_v23, 4 }
 0x3a4   :  { %v547_v26 = vadd.f32 %v546_v24, %v545_v21 }
 0x3a5   :  { %v829_v27 = vadd.f32 %v828_v25, %v827_v23 }
 0x3a6   :  { %v548_v28 = vrot.slane %v547_v26, 1 }
 0x3a7   :  { %v830_v29 = vrot.slane %v829_v27, 2 }
 0x3a8   :  { %v549_v30 = vadd.f32 %v548_v28, %v547_v26 }
 0x3a9   :  { %v831_v31 = vadd.f32 %v830_v29, %v829_v27 }
 0x3aa   :  { %v550_v32 = vmax.f32 %v549_v30, 1e-24 }
 0x3ab   :  { %v832_v40 = vrot.slane %v831_v31, 1 }
 0x3ac   :  { %2088 = vrsqrt.f32 %v550_v32 }
 0x3ad   :  { %v833_v41 = vadd.f32 %v832_v40, %v831_v31 }
 0x3af   :  { %v834_v42 = vmax.f32 %v833_v41, 1e-24 }
 0x3b1   :  { %2090 = vrsqrt.f32 %v834_v42 }
 0x3b9   :  { %v2089_v45 = vpop.eup %2088 }
 0x3ba   :  { %v554_v48 = vmul.f32 %v2089_v45, %v529_v3  ;;  %v552_v52 = vmul.f32 %v2089_v45, %v519_v56  ;;  %v553_v53 = vmul.f32 %v2089_v45, %v524_v55  ;;  %v555_v12 = vmul.f32 %v2089_v45, %v534_v63  ;;  %v919_v55 = vld [vmem:[%s2469_s5] sm:$0xff] }
 0x3bc   :  { %v558_v54 = vmax.f32 %v554_v48, 0.0  ;;  %v556_v57 = vmax.f32 %v552_v52, 0.0  ;;  %v557_v58 = vmax.f32 %v553_v53, 0.0  ;;  %v559_v59 = vmax.f32 %v555_v12, 0.0  ;;  %v1269_v52 = vld [vmem:[%s2472_s8] sm:$0xff] }
 0x3be   :  { %v2091_v60 = vpop.eup %2090  ;;  %562 = vst [vmem:[#allocation2 + $0x10] sm:$0xff] %v558_v54  ;;  %560 = vst [vmem:[#allocation2] sm:$0xff] %v556_v57 }
 0x3bf   :  { %561 = vst [vmem:[#allocation2 + $0x8] sm:$0xff] %v557_v58  ;;  %563 = vst [vmem:[#allocation2 + $0x18] sm:$0xff] %v559_v59  ;;  %v836_v61 = vmul.f32 %v2091_v60, %v821_v18  ;;  %v837_v62 = vmul.f32 %v2091_v60, %v822_v0 }
 0x3c1   :  { %1996 = vmatprep.mubr.msk.f32.mxu0 %vm63_vm0, %v836_v61  ;;  %1999 = vmatprep.subr.mxu1 %v837_v62 }
 0x3c2   :  { %1997 = vmatmul.mubr.msk.f32.vlgmr.msra.gmra.mxu0 %vm63_vm0, %v837_v62  ;;  %2000 = vmatpush3.msra.mxu1 %v837_v62 }
 0x3c3   :  { %2001 = vmatprep.subr.mxu1 %v836_v61  ;;  %2013 = vmatprep.mubr.msk.f32.mxu0 %vm186_vm1, %v919_v55 }
 0x3c4   :  { %2002 = vmatpush3.msra.mxu1 %v836_v61 }
 0x3c5   :  { %2004 = vmatmul.mubr.msk.f32.vlgmr.msra.gmra.mxu1 %vm186_vm1, %v2268_v36  ;;  %2019 = vmatprep.subr.mxu1 %v2301_v11  ;;  %v920_v36 = vld [vmem:[%s2469_s5 + $0x8] sm:$0xff] }
 0x3c6   :  { %2006 = vmatprep.mubr.msk.f32.mxu1 %vm186_vm1, %v2273_v37  ;;  %2020 = vmatpush3.msra.mxu1 %v2301_v11  ;;  %v921_v37 = vld [vmem:[%s2469_s5 + $0x10] sm:$0xff] }
 0x3c9   :  { %2007 = vmatmul.mubr.msk.f32.gmra.mxu1 %vm186_vm1, %v2282_v38  ;;  %v922_v38 = vld [vmem:[%s2469_s5 + $0x18] sm:$0xff] }
 0x482   :  { %v1998_v56 = vpop.f32.mrf.mxu0 }
 0x483   :  { %2009 = vmatprep.subr.mxu0 %v1998_v56 }
 0x484   :  { %v910_v63 = vpop.f32.mrf.mxu0  ;;  %2010 = vmatpush3.msra.mxu0 %v1998_v56 }
 0x485   :  { %2011 = vmatprep.subr.mxu0 %v910_v63  ;;  %v2005_v3 = vpop.f32.mrf.mxu1 }
 0x486   :  { %2012 = vmatpush3.msra.mxu0 %v910_v63 }
 0x487   :  { %2014 = vmatmul.mubr.msk.f32.vlgmr.msra.gmra.mxu0 %vm186_vm1, %v920_v36  ;;  %v1005_v4 = vpop.f32.mrf.mxu1 }
 0x488   :  { %2016 = vmatprep.mubr.msk.f32.mxu0 %vm186_vm1, %v921_v37 }
 0x489   :  { %v2008_v8 = vpop.f32.mrf.mxu1 }
 0x48b   :  { %2017 = vmatmul.mubr.msk.f32.gmra.mxu0 %vm186_vm1, %v922_v38  ;;  %v1015_v17 = vpop.f32.mrf.mxu1 }
 0x48c   :  { %2035 = vmatprep.mubr.msk.f32.mxu0 %vm317_vm2, %v2289_v39 }
 0x547   :  { %v2015_v5 = vpop.f32.mrf.mxu0 }
 0x548   :  { %v1108_v6 = vadd.f32 %v2015_v5, %v2005_v3 }
 0x549   :  { %v1102_v7 = vpop.f32.mrf.mxu0 }
 0x54a   :  { %v1146_v9 = vadd.f32 %v2360_v47, %v1108_v6  ;;  %v1103_v13 = vadd.f32 %v1102_v7, %v1005_v4 }
 0x54b   :  { %v2018_v15 = vpop.f32.mrf.mxu0 }
 0x54c   :  { %v1145_v0 = vadd.f32 %v2354_v43, %v1103_v13  ;;  %v1118_v16 = vadd.f32 %v2018_v15, %v2008_v8  ;;  %v1150_v18 = vmul.f32 %v1146_v9, %v1146_v9 }
 0x54d   :  { %v1112_v1 = vpop.f32.mrf.mxu0 }
 0x54e   :  { %v1149_v19 = vmul.f32 %v1145_v0, %v1145_v0  ;;  %v1148_v20 = vadd.f32 %v2362_v49, %v1118_v16  ;;  %v1113_v39 = vadd.f32 %v1112_v1, %v1015_v17  ;;  %v1154_v22 = vsel %vm63_vm0, %v1150_v18, 0.0  ;;  %v1759_v17 = vpop.permute.xlu1 %1758 }
 0x550   :  { %v1153_v21 = vsel %vm63_vm0, %v1149_v19, 0.0  ;;  %v1147_v2 = vadd.f32 %v2356_v44, %v1113_v39  ;;  %v1152_v23 = vmul.f32 %v1148_v20, %v1148_v20 }
 0x551   :  { %v1155_v24 = vadd.f32 %v1154_v22, %v1153_v21 }
 0x552   :  { %v1151_v47 = vmul.f32 %v1147_v2, %v1147_v2  ;;  %v1158_v26 = vsel %vm63_vm0, %v1152_v23, 0.0  ;;  %v1764_v19 = vpop.permute.xlu1 %1763 }
 0x554   :  { %v1156_v25 = vsel %vm63_vm0, %v1151_v47, 0.0 }
 0x555   :  { %v1157_v43 = vadd.f32 %v1156_v25, %v1155_v24 }
 0x556   :  { %v1769_v24 = vpop.permute.xlu1 %1768 }
 0x557   :  { %v1159_v27 = vadd.f32 %v1158_v26, %v1157_v43 }
 0x559   :  { %v1160_v28 = vrot.slane %v1159_v27, 4 }
 0x55b   :  { %v1161_v29 = vadd.f32 %v1160_v28, %v1159_v27 }
 0x55d   :  { %v1162_v30 = vrot.slane %v1161_v29, 2 }
 0x55f   :  { %v1163_v49 = vadd.f32 %v1162_v30, %v1161_v29 }
 0x561   :  { %v1164_v31 = vrot.slane %v1163_v49, 1 }
 0x563   :  { %v1165_v32 = vadd.f32 %v1164_v31, %v1163_v49 }
 0x565   :  { %v1166_v40 = vmax.f32 %v1165_v32, 1e-24 }
 0x567   :  { %2092 = vrsqrt.f32 %v1166_v40 }
 0x574   :  { %v2093_v44 = vpop.eup %2092 }
 0x575   :  { %v1168_v41 = vmul.f32 %v2093_v44, %v1145_v0  ;;  %v1171_v42 = vmul.f32 %v2093_v44, %v1148_v20  ;;  %v1169_v45 = vmul.f32 %v2093_v44, %v1146_v9  ;;  %v1170_v48 = vmul.f32 %v2093_v44, %v1147_v2 }
 0x577   :  { %2021 = vmatprep.mubr.msk.f32.mxu1 %vm63_vm0, %v1168_v41  ;;  %2027 = vmatprep.subr.mxu0 %v1171_v42 }
 0x578   :  { %2022 = vmatmul.mubr.msk.f32.vlgmr.msra.gmra.mxu1 %vm63_vm0, %v1169_v45  ;;  %2028 = vmatpush3.msra.mxu0 %v1171_v42 }
 0x579   :  { %2024 = vmatprep.mubr.msk.f32.mxu1 %vm63_vm0, %v1170_v48  ;;  %2029 = vmatprep.subr.mxu0 %v1170_v48 }
 0x57a   :  { %2030 = vmatpush3.msra.mxu0 %v1170_v48 }
 0x57b   :  { %2031 = vmatprep.subr.mxu0 %v1169_v45 }
 0x57c   :  { %2025 = vmatmul.mubr.msk.f32.gmra.mxu1 %vm63_vm0, %v1171_v42  ;;  %2032 = vmatpush3.msra.mxu0 %v1169_v45 }
 0x57d   :  { %2033 = vmatprep.subr.mxu0 %v1168_v41  ;;  %2046 = vmatprep.mubr.msk.f32.mxu1 %vm317_vm2, %v1269_v52 }
 0x57e   :  { %2034 = vmatpush3.msra.mxu0 %v1168_v41 }
 0x57f   :  { %2036 = vmatmul.mubr.msk.f32.vlgmr.msra.gmra.mxu0 %vm317_vm2, %v2296_v10  ;;  %2049 = vmatprep.subr.mxu0 %v2301_v11  ;;  %v1270_v10 = vld [vmem:[%s2472_s8 + $0x8] sm:$0xff] }
 0x580   :  { %2050 = vmatpush3.msra.mxu0 %v2301_v11 }
 0x638   :  { %v2023_v53 = vpop.f32.mrf.mxu1 }
 0x63a   :  { %v1250_v12 = vpop.f32.mrf.mxu1 }
 0x63c   :  { %v2026_v54 = vpop.f32.mrf.mxu1 }
 0x63d   :  { %2038 = vmatprep.subr.mxu1 %v2026_v54 }
 0x63e   :  { %v1260_v57 = vpop.f32.mrf.mxu1  ;;  %2039 = vmatpush3.msra.mxu1 %v2026_v54 }
 0x63f   :  { %2040 = vmatprep.subr.mxu1 %v1260_v57  ;;  %v2037_v11 = vpop.f32.mrf.mxu0 }
 0x640   :  { %2041 = vmatpush3.msra.mxu1 %v1260_v57 }
 0x641   :  { %2042 = vmatprep.subr.mxu1 %v2023_v53  ;;  %v1345_v60 = vpop.f32.mrf.mxu0 }
 0x642   :  { %2043 = vmatpush3.msra.mxu1 %v2023_v53 }
 0x643   :  { %2044 = vmatprep.subr.mxu1 %v1250_v12 }
 0x644   :  { %2045 = vmatpush3.msra.mxu1 %v1250_v12 }
 0x645   :  { %2047 = vmatmul.mubr.msk.f32.vlgmr.msra.gmra.mxu1 %vm317_vm2, %v1270_v10 }
 0x705   :  { %v2048_v58 = vpop.f32.mrf.mxu1 }
 0x706   :  { %v1432_v59 = vadd.f32 %v2048_v58, %v2037_v11 }
 0x707   :  { %v1426_v61 = vpop.f32.mrf.mxu1 }
 0x708   :  { %v1448_v62 = vadd.f32 %v2366_v51, %v1432_v59  ;;  %v1427_v55 = vadd.f32 %v1426_v61, %v1345_v60 }
 0x70a   :  { %v1450_v56 = vmul.f32 %v1448_v62, %v1448_v62  ;;  %v1447_v63 = vadd.f32 %v2358_v46, %v1427_v55  ;;  %v1545_v46 = vld [vmem:[%s2475_s11] sm:$0xff] }
 0x70b   :  { %2068 = vmatprep.mubr.msk.f32.mxu1 %vm186_vm1, %v1545_v46 }
 0x70c   :  { %v1449_v36 = vmul.f32 %v1447_v63, %v1447_v63  ;;  %v1452_v37 = vsel %vm63_vm0, %v1450_v56, 0.0 }
 0x70e   :  { %v1451_v38 = vsel %vm63_vm0, %v1449_v36, 0.0 }
 0x70f   :  { %v1453_v3 = vadd.f32 %v1452_v37, %v1451_v38 }
 0x711   :  { %v1454_v4 = vrot.slane %v1453_v3, 4 }
 0x713   :  { %v1455_v5 = vadd.f32 %v1454_v4, %v1453_v3 }
 0x715   :  { %v1456_v6 = vrot.slane %v1455_v5, 2 }
 0x717   :  { %v1457_v7 = vadd.f32 %v1456_v6, %v1455_v5 }
 0x719   :  { %v1458_v8 = vrot.slane %v1457_v7, 1 }
 0x71b   :  { %v1459_v9 = vadd.f32 %v1458_v8, %v1457_v7 }
 0x71d   :  { %v1460_v13 = vmax.f32 %v1459_v9, 1e-24 }
 0x71f   :  { %2094 = vrsqrt.f32 %v1460_v13 }
 0x72c   :  { %v2095_v15 = vpop.eup %2094 }
 0x72d   :  { %v1462_v51 = vmul.f32 %v2095_v15, %v1447_v63  ;;  %v1463_v0 = vmul.f32 %v2095_v15, %v1448_v62 }
 0x72f   :  { %2051 = vmatprep.mubr.msk.f32.mxu0 %vm63_vm0, %v1462_v51  ;;  %2054 = vmatprep.subr.mxu0 %v1463_v0 }
 0x730   :  { %2052 = vmatmul.mubr.msk.f32.vlgmr.msra.gmra.mxu0 %vm63_vm0, %v1463_v0 }
 0x731   :  { %2055 = vmatpush3.msra.mxu0 %v1463_v0  ;;  %2058 = vmatprep.mubr.msk.f32.mxu0 %vm186_vm1, %v2319_v14 }
 0x732   :  { %2056 = vmatprep.subr.mxu0 %v1462_v51 }
 0x733   :  { %2057 = vmatpush3.msra.mxu0 %v1462_v51 }
 0x734   :  { %2059 = vmatmul.mubr.msk.f32.vlgmr.msra.gmra.mxu0 %vm186_vm1, %v2326_v33  ;;  %v1546_v33 = vld [vmem:[%s2475_s11 + $0x8] sm:$0xff] }
 0x735   :  { %2061 = vmatprep.mubr.msk.f32.mxu0 %vm186_vm1, %v2331_v34  ;;  %v1547_v34 = vld [vmem:[%s2475_s11 + $0x10] sm:$0xff] }
 0x738   :  { %2062 = vmatmul.mubr.msk.f32.gmra.mxu0 %vm186_vm1, %v2340_v35  ;;  %v1548_v35 = vld [vmem:[%s2475_s11 + $0x18] sm:$0xff]  ;;  %s2123_s11 = smov [#allocation2]  }
 0x739   :  { %s1811_s16 = sshll.u32 %s2123_s11, 4  ;;  %s1812_s16 = int_to_ptr.vmem [resolvable:$true] %s1811_s16 }
 0x73a   :  { %s2098_s17 = scalar_lea.vmem %s1812_s16, 512  ;;  %p2103_p1 = scmp.lt.s32.totalorder %s1812_s16, %s1812_s16 }
 0x73b   :  { %p2099_p0 = scmp.ne.s32.totalorder %s1812_s16, %s2098_s17  ;;  %p2104_p2 = scmp.lt.s32.totalorder %s2098_s17, %s2098_s17 }
 0x73d   :  { %p2105_p3 = por %p2104_p2, %p2103_p1 }
 0x73f   :  { %p2106_p4 = pnand %p2105_p3, %p2099_p0 }
 0x7f0   :  { %v2053_v16 = vpop.f32.mrf.mxu0 }
 0x7f1   :  { %2064 = vmatprep.subr.mxu1 %v2053_v16 }
 0x7f2   :  { %v1536_v14 = vpop.f32.mrf.mxu0  ;;  %2065 = vmatpush3.msra.mxu1 %v2053_v16 }
 0x7f3   :  { %2066 = vmatprep.subr.mxu1 %v1536_v14 }
 0x7f4   :  { %2067 = vmatpush3.msra.mxu1 %v1536_v14  ;;  %v2060_v1 = vpop.f32.mrf.mxu0 }
 0x7f5   :  { %2069 = vmatmul.mubr.msk.f32.vlgmr.msra.gmra.mxu1 %vm186_vm1, %v1546_v33 }
 0x7f6   :  { %2071 = vmatprep.mubr.msk.f32.mxu1 %vm186_vm1, %v1547_v34  ;;  %v1631_v18 = vpop.f32.mrf.mxu0 }
 0x7f8   :  { %v2063_v2 = vpop.f32.mrf.mxu0 }
 0x7f9   :  { %2072 = vmatmul.mubr.msk.f32.gmra.mxu1 %vm186_vm1, %v1548_v35 }
 0x7fa   :  { %v1641_v26 = vpop.f32.mrf.mxu0 }
 0x8b5   :  { %v2070_v20 = vpop.f32.mrf.mxu1 }
 0x8b6   :  { %v1734_v39 = vadd.f32 %v2070_v20, %v2060_v1 }
 0x8b7   :  { %v1728_v21 = vpop.f32.mrf.mxu1 }
 0x8b8   :  { %v1772_v22 = vadd.f32 %v1759_v17, %v1734_v39  ;;  %v1729_v23 = vadd.f32 %v1728_v21, %v1631_v18 }
 0x8b9   :  { %v2073_v47 = vpop.f32.mrf.mxu1 }
 0x8ba   :  { %v1771_v25 = vadd.f32 %v2364_v50, %v1729_v23  ;;  %v1744_v43 = vadd.f32 %v2073_v47, %v2063_v2  ;;  %v1776_v28 = vmul.f32 %v1772_v22, %v1772_v22 }
 0x8bb   :  { %v1738_v27 = vpop.f32.mrf.mxu1 }
 0x8bc   :  { %v1775_v29 = vmul.f32 %v1771_v25, %v1771_v25  ;;  %v1774_v30 = vadd.f32 %v1769_v24, %v1744_v43  ;;  %v1739_v49 = vadd.f32 %v1738_v27, %v1641_v26  ;;  %v1780_v40 = vsel %vm63_vm0, %v1776_v28, 0.0 }
 0x8be   :  { %v1779_v31 = vsel %vm63_vm0, %v1775_v29, 0.0  ;;  %v1773_v32 = vadd.f32 %v1764_v19, %v1739_v49  ;;  %v1778_v44 = vmul.f32 %v1774_v30, %v1774_v30 }
 0x8bf   :  { %v1781_v42 = vadd.f32 %v1780_v40, %v1779_v31 }
 0x8c0   :  { %v1777_v41 = vmul.f32 %v1773_v32, %v1773_v32  ;;  %v1784_v50 = vsel %vm63_vm0, %v1778_v44, 0.0 }
 0x8c2   :  { %v1782_v45 = vsel %vm63_vm0, %v1777_v41, 0.0 }
 0x8c3   :  { %v1783_v48 = vadd.f32 %v1782_v45, %v1781_v42 }
 0x8c5   :  { %v1785_v52 = vadd.f32 %v1784_v50, %v1783_v48 }
 0x8c7   :  { %v1786_v53 = vrot.slane %v1785_v52, 4 }
 0x8c9   :  { %v1787_v12 = vadd.f32 %v1786_v53, %v1785_v52 }
 0x8cb   :  { %v1788_v54 = vrot.slane %v1787_v12, 2 }
 0x8cd   :  { %v1789_v57 = vadd.f32 %v1788_v54, %v1787_v12 }
 0x8cf   :  { %v1790_v10 = vrot.slane %v1789_v57, 1 }
 0x8d1   :  { %v1791_v11 = vadd.f32 %v1790_v10, %v1789_v57 }
 0x8d3   :  { %v1792_v58 = vmax.f32 %v1791_v11, 1e-24 }
 0x8d5   :  { %2096 = vrsqrt.f32 %v1792_v58 }
 0x8e2   :  { %v2097_v59 = vpop.eup %2096 }
 0x8e3   :  { %v1796_v60 = vmul.f32 %v2097_v59, %v1773_v32  ;;  %v1794_v61 = vmul.f32 %v2097_v59, %v1771_v25  ;;  %v1795_v62 = vmul.f32 %v2097_v59, %v1772_v22  ;;  %v1797_v55 = vmul.f32 %v2097_v59, %v1774_v30 }
 0x8e5   :  { %v1800_v56 = vmax.f32 %v1796_v60, 0.0  ;;  %v1798_v63 = vmax.f32 %v1794_v61, 0.0  ;;  %v1799_v36 = vmax.f32 %v1795_v62, 0.0  ;;  %v1801_v37 = vmax.f32 %v1797_v55, 0.0 }
 0x8e7   :  { %1804 = vst.msk [vmem:[#allocation2 + $0x10] sm:$0xff] %vm63_vm0, %v1800_v56  ;;  %1802 = vst.msk [vmem:[#allocation2] sm:$0xff] %vm63_vm0, %v1798_v63 }
 0x8e8   :  { %1803 = vst.msk [vmem:[#allocation2 + $0x8] sm:$0xff] %vm63_vm0, %v1799_v36  ;;  %1805 = vst.msk [vmem:[#allocation2 + $0x18] sm:$0xff] %vm63_vm0, %v1801_v37 }
 0x8e9   :  { %2109 = shalt.err (!%p2106_p4)
}
 0x8ea   :  { %s2124_s18 = smov 128   ;;  %s2125_s19 = smov 8  }
 0x8eb   :  { %1817 = dma.vmem_to_hbm [thread:$0]  %s1812_s16, 512, %s2478_s14, [#allocation3], %s2124_s18, %s2124_s18, %s2125_s19  }
 0x8ec   :  { %2118 = dma.done.wait [#allocation3], 512  }
 0x8ed   :  { %2119 = vsyncadd [#allocation3], 4294966784 }
 0x8ee   :  { %1821 = vsyncpa [#allocation3], 1 }

</bundles_post_ra>
